<compile_context>
chip_gen: v6e
topology: v6e:2x2x1
jax: 0.10.0
libtpu: 0.0.40
codegen_flags: <defaults>
</compile_context>

<pallas_src>
import functools

import jax
import jax.numpy as jnp
from jax import lax
from jax.experimental import pallas as pl
from jax.experimental.pallas import tpu as pltpu


_LANE = 128


def _round_up(x, m):
    return (x + m - 1) // m * m


def _cdiv(a, b):
    return -(-a // b)


@functools.lru_cache(maxsize=1)
def _vmem_budget_bytes():
    """Generation-aware VMEM budget: ~3/4 of physical VMEM.

    v7x (64 MiB/TC) -> 48 MiB; v5e/v6e (128 MiB) -> 96 MiB.  Falls back to the
    conservative 48 MiB (v7x assumption) if the hardware query is unavailable.
    """
    phys = 64 * 1024 * 1024
    try:
        phys = int(getattr(pltpu.get_tpu_info(), "vmem_capacity_bytes", phys))
    except Exception:
        pass
    return max(32 * 1024 * 1024, min(phys * 3 // 4, 112 * 1024 * 1024))


def _pick_block_m(m, kp, cp, budget_bytes, bm_cap):
    """Largest M tile that fits the VMEM budget.

    256-aligned (256-wide v6e/v7x MXU; also a multiple of the bf16 (16,128) tile) and,
    when there is enough work, capped so the grid has >= 2 steps so v7x's two
    TensorCores both get tiles (negligible overhead on single-TC v5e/v6e).
    """
    gran = 256 if m >= 256 else 16
    bm = min(_round_up(bm_cap, gran), _round_up(m, gran))
    if m >= 2 * gran:
        bm = min(bm, _round_up(_cdiv(m, 2), gran))
    # Double-buffered per-row VMEM bytes:
    #   kernel 1: bf16 patches in (2x) + bf16 y out (2x);  kernel 2: bf16 in (2x) + bf16 out (2x).
    per_row = max(2 * kp * 2 + 2 * cp * 2, 2 * cp * 2 + 2 * cp * 2)
    # Resident weights (constant index map but still double-buffered by the pipeline),
    # stats / scale / shift blocks, plus 1 MiB slack.
    fixed = 2 * kp * cp * 2 + 32 * cp * 4 + (1 << 20)
    bm_fit = max(budget_bytes - fixed, 0) // per_row
    bm_fit = max((bm_fit // gran) * gran, 16)
    return max(min(bm, bm_fit), 16)


def _conv_stats_kernel(p_ref, w_ref, y_ref, sum_ref, sq_ref):
    # One fused MXU matmul: the conv taps are folded into the contraction K = KH*KW*Cin.
    y = jnp.dot(p_ref[...], w_ref[...], preferred_element_type=jnp.float32)
    # Train-mode BN partial sums from the f32 accumulator (before the bf16 downcast).
    # NOTE: var = E[y^2] - E[y]^2 accumulated in f32; adequate at these magnitudes.  For
    # very large M with |mean| >> std a shifted / Welford accumulation would be needed.
    sum_ref[...] = jnp.sum(y, axis=0, keepdims=True).reshape(sum_ref.shape)
    sq_ref[...] = jnp.sum(y * y, axis=0, keepdims=True).reshape(sq_ref.shape)
    y_ref[...] = y.astype(y_ref.dtype)      # bf16 store: halves y's HBM traffic


def _bn_prelu_kernel(y_ref, scale_ref, shift_ref, alpha_ref, o_ref):
    # Fused BN (single scale/shift) + PReLU (shared alpha, nn.PReLU() default).
    z = y_ref[...].astype(jnp.float32) * scale_ref[...] + shift_ref[...]
    a = alpha_ref[0, 0]
    o_ref[...] = jnp.where(z >= 0.0, z, a * z).astype(o_ref.dtype)


@functools.partial(
    jax.jit,
    static_argnames=("stride", "padding", "eps", "block_m", "vmem_budget"))
def _conv_bn_prelu_impl(x_nchw, w_oihw, bias, gamma, beta, alpha,
                        *, stride, padding, eps, block_m, vmem_budget):
    # TODO(synk): stride > 1 and dilation are not implemented (module default is stride=1).
    assert stride == 1, "only stride=1 (module default) is implemented"
    # Train-mode BN subtracts the batch mean, which cancels the conv bias exactly and
    # leaves the variance unchanged -> the bias add is dead math and is dropped.
    # (An eval-mode / running-stats path would have to reinstate it.)
    del bias

    N, Cin, Hin, Win = x_nchw.shape
    Cout, _, KH, KW = w_oihw.shape
    H = Hin + 2 * padding - KH + 1
    W = Win + 2 * padding - KW + 1
    M = N * H * W
    K = KH * KW * Cin

    Kp = _round_up(K, _LANE)        # lane-dense matmul contraction
    Cp = _round_up(Cout, _LANE)     # lane-dense (unmasked) output stores
    BM = _pick_block_m(M, Kp, Cp, vmem_budget, block_m)
    Mp = _round_up(M, BM)
    n_tiles = Mp // BM

    # ---- glue: NCHW -> NHWC (bf16), spatial zero-pad, im2col (taps folded into K) ----
    # bf16 from the start so the materialized (Mp, K) slab is half-width in HBM.
    # TODO(synk): next structural step is to eliminate this materialized im2col slab by
    # DMA-ing halo row-slabs of the padded NHWC activation (memory_space=pl.ANY) and
    # building the (BM, K) patch tile in-kernel; kept as XLA glue here for robustness.
    x = jnp.transpose(x_nchw, (0, 2, 3, 1)).astype(jnp.bfloat16)
    x = jnp.pad(x, ((0, 0), (padding, padding), (padding, padding), (0, 0)))
    slabs = []
    for kh in range(KH):
        for kw in range(KW):
            slabs.append(lax.slice(x, (0, kh, kw, 0), (N, kh + H, kw + W, Cin)))
    patches = jnp.concatenate(slabs, axis=-1).reshape(M, K)
    patches = jnp.pad(patches, ((0, Mp - M), (0, Kp - K)))

    # OIHW -> (KH*KW*Cin, Cout), bf16, zero-padded to (Kp, Cp).
    w2 = jnp.transpose(w_oihw, (2, 3, 1, 0)).reshape(K, Cout).astype(jnp.bfloat16)
    w2 = jnp.pad(w2, ((0, Kp - K), (0, Cp - Cout)))

    # ---- kernel 1: conv matmul (f32 acc) + per-tile BN partial sums, y stored bf16 ----
    y, psum, psq = pl.pallas_call(
        _conv_stats_kernel,
        out_shape=(jax.ShapeDtypeStruct((Mp, Cp), jnp.bfloat16),
                   jax.ShapeDtypeStruct((n_tiles, 1, Cp), jnp.float32),
                   jax.ShapeDtypeStruct((n_tiles, 1, Cp), jnp.float32)),
        grid_spec=pltpu.PrefetchScalarGridSpec(
            num_scalar_prefetch=0,
            grid=(n_tiles,),
            in_specs=[pl.BlockSpec((BM, Kp), lambda i: (i, 0)),     # im2col patches
                      pl.BlockSpec((Kp, Cp), lambda i: (0, 0))],    # resident weights
            out_specs=[pl.BlockSpec((BM, Cp), lambda i: (i, 0)),    # conv output (bf16)
                       pl.BlockSpec((1, 1, Cp), lambda i: (i, 0, 0)),   # sum y
                       pl.BlockSpec((1, 1, Cp), lambda i: (i, 0, 0))]), # sum y^2
        compiler_params=pltpu.CompilerParams(
            dimension_semantics=("parallel",),
            vmem_limit_bytes=vmem_budget),
    )(patches, w2)

    # ---- glue (O(Cout) scalars): fold BN into one scale/shift ----
    ch_sum = jnp.sum(psum[:, 0, :Cout], axis=0)
    ch_sq = jnp.sum(psq[:, 0, :Cout], axis=0)
    inv_m = 1.0 / float(M)              # padded rows contribute 0 to both sums -> exact
    mean = ch_sum * inv_m
    var = jnp.maximum(ch_sq * inv_m - mean * mean, 0.0)   # biased variance (train mode)
    scale = gamma.astype(jnp.float32) * lax.rsqrt(var + eps)
    shift = beta.astype(jnp.float32) - mean * scale
    scale_p = jnp.pad(scale.reshape(1, Cout), ((0, 0), (0, Cp - Cout)))
    shift_p = jnp.pad(shift.reshape(1, Cout), ((0, 0), (0, Cp - Cout)))
    alpha_sm = jnp.asarray(alpha, jnp.float32).reshape(1, 1)

    # ---- kernel 2: fused BN scale/shift + PReLU; bf16 in/out aliased onto y ----
    out_flat = pl.pallas_call(
        _bn_prelu_kernel,
        out_shape=jax.ShapeDtypeStruct((Mp, Cp), jnp.bfloat16),
        grid_spec=pltpu.PrefetchScalarGridSpec(
            num_scalar_prefetch=0,
            grid=(n_tiles,),
            in_specs=[pl.BlockSpec((BM, Cp), lambda i: (i, 0)),
                      pl.BlockSpec((1, Cp), lambda i: (0, 0)),
                      pl.BlockSpec((1, Cp), lambda i: (0, 0)),
                      pl.BlockSpec(memory_space=pltpu.SMEM)],      # shared PReLU alpha
            out_specs=pl.BlockSpec((BM, Cp), lambda i: (i, 0))),
        input_output_aliases={0: 0},
        compiler_params=pltpu.CompilerParams(
            dimension_semantics=("parallel",),
            vmem_limit_bytes=vmem_budget),
    )(y, scale_p, shift_p, alpha_sm)

    # Final relayout reads bf16 and upcasts to f32 in the same fused pass.
    # TODO(synk): if the downstream consumer accepts NHWC, drop this relayout entirely.
    out = out_flat[:M, :Cout].astype(jnp.float32).reshape(N, H, W, Cout)
    return jnp.transpose(out, (0, 3, 1, 2))


def conv_bn_prelu(x_nchw, w_oihw, bias, gamma, beta, alpha,
                  *, stride=1, padding=1, eps=1e-5, block_m=8192):
    return _conv_bn_prelu_impl(
        x_nchw, w_oihw, bias, gamma, beta, alpha,
        stride=stride, padding=padding, eps=eps,
        block_m=block_m, vmem_budget=_vmem_budget_bytes())


def _reference(x_nchw, w_oihw, bias, gamma, beta, alpha, padding=1, eps=1e-5):
    y = lax.conv_general_dilated(
        x_nchw, w_oihw, window_strides=(1, 1),
        padding=[(padding, padding), (padding, padding)],
        dimension_numbers=("NCHW", "OIHW", "NCHW"))
    y = y + bias[None, :, None, None]
    mean = jnp.mean(y, axis=(0, 2, 3), keepdims=True)
    var = jnp.mean((y - mean) ** 2, axis=(0, 2, 3), keepdims=True)
    y = (y - mean) / jnp.sqrt(var + eps)
    y = y * gamma[None, :, None, None] + beta[None, :, None, None]
    return jnp.where(y >= 0.0, y, alpha * y)


if __name__ == "__main__":
    key = jax.random.PRNGKey(0)
    k1, k2, k3, k4, k5 = jax.random.split(key, 5)

    N, Cin, Cout, H, W = 2, 4, 8, 16, 16
    KH = KW = 3

    x = jax.random.normal(k1, (N, Cin, H, W), jnp.float32)
    w = 0.1 * jax.random.normal(k2, (Cout, Cin, KH, KW), jnp.float32)   # Conv2d weight
    b = 0.1 * jax.random.normal(k3, (Cout,), jnp.float32)               # Conv2d bias
    gamma = 1.0 + 0.1 * jax.random.normal(k4, (Cout,), jnp.float32)     # BN weight
    beta = 0.1 * jax.random.normal(k5, (Cout,), jnp.float32)            # BN bias
    alpha = 0.25                                                        # nn.PReLU() default

    out = conv_bn_prelu(x, w, b, gamma, beta, alpha)
    out = jax.block_until_ready(out)

    ref = _reference(x, w, b, gamma, beta, alpha)
    assert out.shape == (N, Cout, H, W), out.shape
    # bf16 matmul operands + bf16 intermediate/output storage (f32 accumulation and f32
    # BN statistics) vs the pure-f32 reference -> relaxed tolerance.
    if not bool(jnp.allclose(out, ref, rtol=3e-2, atol=3e-2)):
        raise AssertionError("Pallas ConvBnPReLU mismatch vs reference")
    print("KERNEL_OK")
</pallas_src>

<mosaic_0001>
module attributes {stable_mosaic.version = 11 : i64} {
  func.func @_conv_stats_kernel(%arg0: i32, %arg1: memref<256x128xbf16, #tpu.memory_space<vmem>>, %arg2: memref<128x128xbf16, #tpu.memory_space<vmem>>, %arg3: memref<256x128xbf16, #tpu.memory_space<vmem>>, %arg4: memref<1x1x128xf32, #tpu.memory_space<vmem>>, %arg5: memref<1x1x128xf32, #tpu.memory_space<vmem>>) attributes {dimension_semantics = [#tpu.dimension_semantics<parallel>], iteration_bounds = array<i64: 2>, scalar_prefetch = 0 : i64, scratch_operands = 0 : i64, tpu.core_type = #tpu.core_type<tc>, window_params = [{transform_indices = @transform_0, window_bounds = array<i64: 256, 128>}, {pipeline_mode = #tpu.pipeline_mode<synchronous>, transform_indices = @transform_1, window_bounds = array<i64: 128, 128>}, {transform_indices = @transform_2, window_bounds = array<i64: 256, 128>}, {transform_indices = @transform_3, window_bounds = array<i64: 1, 1, 128>}, {transform_indices = @transform_4, window_bounds = array<i64: 1, 1, 128>}]} {
    %c0 = arith.constant 0 : index
    %c0_0 = arith.constant 0 : index
    %0 = vector.load %arg1[%c0, %c0_0] : memref<256x128xbf16, #tpu.memory_space<vmem>>, vector<256x128xbf16>
    %c0_1 = arith.constant 0 : index
    %c0_2 = arith.constant 0 : index
    %1 = vector.load %arg2[%c0_1, %c0_2] : memref<128x128xbf16, #tpu.memory_space<vmem>>, vector<128x128xbf16>
    %cst = arith.constant dense<0.000000e+00> : vector<256x128xf32>
    %2 = tpu.matmul %0, %1, %cst {dimension_numbers = #tpu.dot_dimension_numbers<[1], [0], [0], [1], [0, 0, 1, 1], [], []>} : vector<256x128xbf16>, vector<128x128xbf16>, vector<256x128xf32> -> vector<256x128xf32>
    %cst_3 = arith.constant dense<0.000000e+00> : vector<128xf32>
    %3 = vector.multi_reduction <add>, %2, %cst_3 [0] : vector<256x128xf32> to vector<128xf32>
    %4 = vector.shape_cast %3 : vector<128xf32> to vector<1x128xf32>
    %5 = vector.shape_cast %4 : vector<1x128xf32> to vector<1x1x128xf32>
    %c0_4 = arith.constant 0 : index
    %c0_5 = arith.constant 0 : index
    %c0_6 = arith.constant 0 : index
    %6 = vector.load %arg4[%c0_4, %c0_5, %c0_6] : memref<1x1x128xf32, #tpu.memory_space<vmem>>, vector<1x1x128xf32>
    tpu.vector_store %arg4[%c0_4, %c0_5, %c0_6], %5 {strides = array<i32>} : memref<1x1x128xf32, #tpu.memory_space<vmem>>, vector<1x1x128xf32>,
    %7 = arith.mulf %2, %2 : vector<256x128xf32>
    %cst_7 = arith.constant dense<0.000000e+00> : vector<128xf32>
    %8 = vector.multi_reduction <add>, %7, %cst_7 [0] : vector<256x128xf32> to vector<128xf32>
    %9 = vector.shape_cast %8 : vector<128xf32> to vector<1x128xf32>
    %10 = vector.shape_cast %9 : vector<1x128xf32> to vector<1x1x128xf32>
    %c0_8 = arith.constant 0 : index
    %c0_9 = arith.constant 0 : index
    %c0_10 = arith.constant 0 : index
    %11 = vector.load %arg5[%c0_8, %c0_9, %c0_10] : memref<1x1x128xf32, #tpu.memory_space<vmem>>, vector<1x1x128xf32>
    tpu.vector_store %arg5[%c0_8, %c0_9, %c0_10], %10 {strides = array<i32>} : memref<1x1x128xf32, #tpu.memory_space<vmem>>, vector<1x1x128xf32>,
    %12 = arith.truncf %2 : vector<256x128xf32> to vector<256x128xbf16>
    %c0_11 = arith.constant 0 : index
    %c0_12 = arith.constant 0 : index
    %13 = vector.load %arg3[%c0_11, %c0_12] : memref<256x128xbf16, #tpu.memory_space<vmem>>, vector<256x128xbf16>
    tpu.vector_store %arg3[%c0_11, %c0_12], %12 {strides = array<i32>} : memref<256x128xbf16, #tpu.memory_space<vmem>>, vector<256x128xbf16>,
    return
  }
  func.func @transform_0(%arg0: i32) -> (i32, i32) {
    %c0_i32 = arith.constant 0 : i32
    %c0_i32_0 = arith.constant 0 : i32
    return %arg0, %c0_i32 : i32, i32
  }
  func.func @transform_1(%arg0: i32) -> (i32, i32) {
    %c0_i32 = arith.constant 0 : i32
    %c0_i32_0 = arith.constant 0 : i32
    %c0_i32_1 = arith.constant 0 : i32
    return %c0_i32, %c0_i32_0 : i32, i32
  }
  func.func @transform_2(%arg0: i32) -> (i32, i32) {
    %c0_i32 = arith.constant 0 : i32
    %c0_i32_0 = arith.constant 0 : i32
    return %arg0, %c0_i32 : i32, i32
  }
  func.func @transform_3(%arg0: i32) -> (i32, i32, i32) {
    %c0_i32 = arith.constant 0 : i32
    %c0_i32_0 = arith.constant 0 : i32
    %c0_i32_1 = arith.constant 0 : i32
    return %arg0, %c0_i32, %c0_i32_0 : i32, i32, i32
  }
  func.func @transform_4(%arg0: i32) -> (i32, i32, i32) {
    %c0_i32 = arith.constant 0 : i32
    %c0_i32_0 = arith.constant 0 : i32
    %c0_i32_1 = arith.constant 0 : i32
    return %arg0, %c0_i32, %c0_i32_0 : i32, i32, i32
  }
}

module attributes {stable_mosaic.version = 11 : i64} {
  func.func @_bn_prelu_kernel(%arg0: i32, %arg1: memref<256x128xbf16, #tpu.memory_space<vmem>>, %arg2: memref<1x128xf32, #tpu.memory_space<vmem>>, %arg3: memref<1x128xf32, #tpu.memory_space<vmem>>, %arg4: memref<1x1xf32, #tpu.memory_space<smem>>, %arg5: memref<256x128xbf16, #tpu.memory_space<vmem>>) attributes {dimension_semantics = [#tpu.dimension_semantics<parallel>], iteration_bounds = array<i64: 2>, scalar_prefetch = 0 : i64, scratch_operands = 0 : i64, tpu.core_type = #tpu.core_type<tc>, window_params = [{transform_indices = @transform_0, window_bounds = array<i64: 256, 128>}, {pipeline_mode = #tpu.pipeline_mode<synchronous>, transform_indices = @transform_1, window_bounds = array<i64: 1, 128>}, {pipeline_mode = #tpu.pipeline_mode<synchronous>, transform_indices = @transform_2, window_bounds = array<i64: 1, 128>}, {transform_indices = @transform_3, window_bounds = array<i64: 1, 1>}, {transform_indices = @transform_4, window_bounds = array<i64: 256, 128>}]} {
    %c0 = arith.constant 0 : index
    %c0_0 = arith.constant 0 : index
    %0 = vector.load %arg1[%c0, %c0_0] : memref<256x128xbf16, #tpu.memory_space<vmem>>, vector<256x128xbf16>
    %1 = arith.extf %0 : vector<256x128xbf16> to vector<256x128xf32>
    %c0_1 = arith.constant 0 : index
    %c0_2 = arith.constant 0 : index
    %2 = vector.load %arg2[%c0_1, %c0_2] : memref<1x128xf32, #tpu.memory_space<vmem>>, vector<1x128xf32>
    %3 = vector.broadcast %2 : vector<1x128xf32> to vector<256x128xf32>
    %4 = arith.mulf %1, %3 : vector<256x128xf32>
    %c0_3 = arith.constant 0 : index
    %c0_4 = arith.constant 0 : index
    %5 = vector.load %arg3[%c0_3, %c0_4] : memref<1x128xf32, #tpu.memory_space<vmem>>, vector<1x128xf32>
    %6 = vector.broadcast %5 : vector<1x128xf32> to vector<256x128xf32>
    %7 = arith.addf %4, %6 : vector<256x128xf32>
    %c0_5 = arith.constant 0 : index
    %c0_6 = arith.constant 0 : index
    %8 = memref.load %arg4[%c0_5, %c0_6] : memref<1x1xf32, #tpu.memory_space<smem>>
    %cst = arith.constant 0.000000e+00 : f32
    %9 = vector.broadcast %cst : f32 to vector<256x128xf32>
    %10 = arith.cmpf oge, %7, %9 : vector<256x128xf32>
    %11 = vector.broadcast %8 : f32 to vector<256x128xf32>
    %12 = arith.mulf %11, %7 : vector<256x128xf32>
    %13 = arith.select %10, %7, %12 : vector<256x128xi1>, vector<256x128xf32>
    %14 = arith.truncf %13 : vector<256x128xf32> to vector<256x128xbf16>
    %c0_7 = arith.constant 0 : index
    %c0_8 = arith.constant 0 : index
    %15 = vector.load %arg5[%c0_7, %c0_8] : memref<256x128xbf16, #tpu.memory_space<vmem>>, vector<256x128xbf16>
    tpu.vector_store %arg5[%c0_7, %c0_8], %14 {strides = array<i32>} : memref<256x128xbf16, #tpu.memory_space<vmem>>, vector<256x128xbf16>,
    return
  }
  func.func @transform_0(%arg0: i32) -> (i32, i32) {
    %c0_i32 = arith.constant 0 : i32
    %c0_i32_0 = arith.constant 0 : i32
    return %arg0, %c0_i32 : i32, i32
  }
  func.func @transform_1(%arg0: i32) -> (i32, i32) {
    %c0_i32 = arith.constant 0 : i32
    %c0_i32_0 = arith.constant 0 : i32
    %c0_i32_1 = arith.constant 0 : i32
    return %c0_i32, %c0_i32_0 : i32, i32
  }
  func.func @transform_2(%arg0: i32) -> (i32, i32) {
    %c0_i32 = arith.constant 0 : i32
    %c0_i32_0 = arith.constant 0 : i32
    %c0_i32_1 = arith.constant 0 : i32
    return %c0_i32, %c0_i32_0 : i32, i32
  }
  func.func @transform_3(%arg0: i32) -> (i32, i32) {
    %c0_i32 = arith.constant 0 : i32
    %c0_i32_0 = arith.constant 0 : i32
    %c0_i32_1 = arith.constant 0 : i32
    return %c0_i32, %c0_i32_0 : i32, i32
  }
  func.func @transform_4(%arg0: i32) -> (i32, i32) {
    %c0_i32 = arith.constant 0 : i32
    %c0_i32_0 = arith.constant 0 : i32
    return %arg0, %c0_i32 : i32, i32
  }
}

</mosaic_0001>

<bundles_post_ra>
// kernel: _conv_bn_prelu_impl.3
= control target key start
LH: loop header
LB: loop body
LE: loop exit
PB: predicated region body
PF: predicated region fallthrough
CT: control target
= control target key end

     0   :  { %s953_s17 = smov 0   ;;  %s1169_s0 = inlined_call_operand.vmem [shape: bf16[512,128], index: 0, kind: input, shape index: {}, may-alias: {0,4}]   ;;  %s1170_s1 = inlined_call_operand.vmem [shape: f32[1,128], index: 1, kind: input, shape index: {}]   ;;  %s1171_s2 = inlined_call_operand.vmem [shape: f32[1,128], index: 2, kind: input, shape index: {}]   ;;  %s1172_s3 = inlined_call_operand.<no memory space> [shape: f32[1,1], index: 3, kind: input, shape index: {}]   ;;  %s1173_s4 = inlined_call_operand.vmem [shape: bf16[512,128], index: 4, kind: output, shape index: {}, may-alias: {0,4}]  }
   0x1   :  { %9 = sst [smem:[#allocation2]] %s1172_s3 }
   0x2 LB: > { %s658_s18 = sadd.s32 4294967295, %s923_s17   ;;  %p662_p0 = scmp.ge.s32.totalorder %s923_s17, 1  ;;  %s923_s17 = sphi %s953_s17, %s15_s17  }
   0x3   : > { %p164_p1 = scmp.lt.s32.totalorder %s923_s17, 3 }
   0x5   : > { %p165_p2 = pnand %p662_p0, %p164_p1 }
   0x6   : > { %s663_s19 = sshll.u32 (!%p165_p2), %s658_s18, 5  ;;  %s344_s20 = sld [smem:[#allocation2]] (!%p165_p2) }
   0x7   : > { %168 = sbr.rel (%p165_p2) target bundleno = 72 (0x48), region = 36  ;;  %p191_p3 = scmp.lt.s32.totalorder (!%p165_p2), %s663_s19, 63 }
   0xc   : > { %s1175_s19 = smov (!%p191_p3, %s663_s19), 63  ;;  %v974_v3 = vstv %s344_s20  ;;  %v667_v41 = vld [vmem:[%s1170_s1] ss:$0 sm:$0xff] }
   0xd   : > { %s664_s3 = sshll.u32 %s1175_s19, 2 }
   0xe   : > { %s969_s23 = scalar_lea.vmem %s1169_s0, %s664_s3  ;;  %s1048_s30 = scalar_lea.vmem %s1173_s4, %s664_s3 }
   0xf   : > { %v736_v0 = vld [vmem:[%s969_s23] sm:$0xff]   ;;  %v879_v1 = vld [vmem:[%s969_s23 + $0x8] sm:$0xff]   ;;  %v880_v2 = vld [vmem:[%s969_s23 + $0x10] sm:$0xff]  }
  0x10   : > { %v737_v4 = vunpack.c.l.bf16 %v736_v0  ;;  %v738_v5 = vunpack.c.h.bf16 %v736_v0  ;;  %v741_v6 = vunpack.c.l.bf16 %v879_v1  ;;  %v742_v7 = vunpack.c.h.bf16 %v879_v1  ;;  %v881_v8 = vld [vmem:[%s969_s23 + $0x18] sm:$0xff]   ;;  %v882_v9 = vld [vmem:[%s969_s23 + $0x20] sm:$0xff]   ;;  %v883_v10 = vld [vmem:[%s969_s23 + $0x28] sm:$0xff]  }
  0x11   : > { %v745_v11 = vunpack.c.l.bf16 %v880_v2  ;;  %v746_v12 = vunpack.c.h.bf16 %v880_v2  ;;  %v749_v13 = vunpack.c.l.bf16 %v881_v8  ;;  %v750_v14 = vunpack.c.h.bf16 %v881_v8  ;;  %v884_v15 = vld [vmem:[%s969_s23 + $0x30] sm:$0xff]   ;;  %v885_v16 = vld [vmem:[%s969_s23 + $0x38] sm:$0xff]   ;;  %v886_v17 = vld [vmem:[%s969_s23 + $0x40] sm:$0xff]  }
  0x12   : > { %v753_v18 = vunpack.c.l.bf16 %v882_v9  ;;  %v754_v19 = vunpack.c.h.bf16 %v882_v9  ;;  %v757_v20 = vunpack.c.l.bf16 %v883_v10  ;;  %v758_v21 = vunpack.c.h.bf16 %v883_v10  ;;  %v887_v22 = vld [vmem:[%s969_s23 + $0x48] sm:$0xff]   ;;  %v888_v23 = vld [vmem:[%s969_s23 + $0x50] sm:$0xff]   ;;  %v889_v24 = vld [vmem:[%s969_s23 + $0x58] sm:$0xff]  }
  0x13   : > { %v761_v25 = vunpack.c.l.bf16 %v884_v15  ;;  %v762_v26 = vunpack.c.h.bf16 %v884_v15  ;;  %v765_v27 = vunpack.c.l.bf16 %v885_v16  ;;  %v766_v28 = vunpack.c.h.bf16 %v885_v16  ;;  %v890_v29 = vld [vmem:[%s969_s23 + $0x60] sm:$0xff]   ;;  %v891_v30 = vld [vmem:[%s969_s23 + $0x68] sm:$0xff]   ;;  %v892_v35 = vld [vmem:[%s969_s23 + $0x70] sm:$0xff]  }
  0x14   : > { %v769_v31 = vunpack.c.l.bf16 %v886_v17  ;;  %v770_v32 = vunpack.c.h.bf16 %v886_v17  ;;  %v773_v33 = vunpack.c.l.bf16 %v887_v22  ;;  %v774_v34 = vunpack.c.h.bf16 %v887_v22  ;;  %v893_v36 = vld [vmem:[%s969_s23 + $0x78] sm:$0xff]  }
  0x15   : > { %v777_v37 = vunpack.c.l.bf16 %v888_v23  ;;  %v778_v38 = vunpack.c.h.bf16 %v888_v23  ;;  %v781_v39 = vunpack.c.l.bf16 %v889_v24  ;;  %v782_v40 = vunpack.c.h.bf16 %v889_v24 }
  0x16   : > { %v785_v42 = vunpack.c.l.bf16 %v890_v29  ;;  %v786_v43 = vunpack.c.h.bf16 %v890_v29  ;;  %v789_v44 = vunpack.c.l.bf16 %v891_v30  ;;  %v790_v45 = vunpack.c.h.bf16 %v891_v30 }
  0x17   : > { %v793_v46 = vunpack.c.l.bf16 %v892_v35  ;;  %v794_v47 = vunpack.c.h.bf16 %v892_v35  ;;  %v797_v48 = vunpack.c.l.bf16 %v893_v36  ;;  %v798_v49 = vunpack.c.h.bf16 %v893_v36 }
  0x18   : > { %v273_v50 = vmul.f32 %v737_v4, %v667_v41  ;;  %v274_v51 = vmul.f32 %v738_v5, %v667_v41  ;;  %v275_v52 = vmul.f32 %v741_v6, %v667_v41  ;;  %v276_v53 = vmul.f32 %v742_v7, %v667_v41 }
  0x19   : > { %v277_v54 = vmul.f32 %v745_v11, %v667_v41  ;;  %v278_v55 = vmul.f32 %v746_v12, %v667_v41  ;;  %v279_v56 = vmul.f32 %v749_v13, %v667_v41  ;;  %v280_v57 = vmul.f32 %v750_v14, %v667_v41  ;;  %v668_v11 = vld [vmem:[%s1171_s2] ss:$0 sm:$0xff] }
  0x1a   : > { %v281_v58 = vmul.f32 %v753_v18, %v667_v41  ;;  %v282_v59 = vmul.f32 %v754_v19, %v667_v41  ;;  %v283_v60 = vmul.f32 %v757_v20, %v667_v41  ;;  %v284_v61 = vmul.f32 %v758_v21, %v667_v41 }
  0x1b   : > { %v285_v62 = vmul.f32 %v761_v25, %v667_v41  ;;  %v286_v63 = vmul.f32 %v762_v26, %v667_v41  ;;  %v287_v0 = vmul.f32 %v765_v27, %v667_v41  ;;  %v288_v1 = vmul.f32 %v766_v28, %v667_v41 }
  0x1c   : > { %v289_v2 = vmul.f32 %v769_v31, %v667_v41  ;;  %v290_v8 = vmul.f32 %v770_v32, %v667_v41  ;;  %v291_v9 = vmul.f32 %v773_v33, %v667_v41  ;;  %v292_v10 = vmul.f32 %v774_v34, %v667_v41 }
  0x1d   : > { %v293_v4 = vmul.f32 %v777_v37, %v667_v41  ;;  %v294_v5 = vmul.f32 %v778_v38, %v667_v41  ;;  %v295_v6 = vmul.f32 %v781_v39, %v667_v41  ;;  %v296_v7 = vmul.f32 %v782_v40, %v667_v41 }
  0x1e   : > { %v297_v12 = vmul.f32 %v785_v42, %v667_v41  ;;  %v298_v13 = vmul.f32 %v786_v43, %v667_v41  ;;  %v299_v14 = vmul.f32 %v789_v44, %v667_v41  ;;  %v300_v15 = vmul.f32 %v790_v45, %v667_v41 }
  0x1f   : > { %v301_v16 = vmul.f32 %v793_v46, %v667_v41  ;;  %v302_v17 = vmul.f32 %v794_v47, %v667_v41  ;;  %v303_v18 = vmul.f32 %v797_v48, %v667_v41  ;;  %v304_v19 = vmul.f32 %v798_v49, %v667_v41 }
  0x20   : > { %v312_v20 = vadd.f32 %v668_v11, %v273_v50  ;;  %v313_v21 = vadd.f32 %v668_v11, %v274_v51  ;;  %v314_v22 = vadd.f32 %v668_v11, %v275_v52  ;;  %v315_v23 = vadd.f32 %v668_v11, %v276_v53 }
  0x21   : > { %v316_v24 = vadd.f32 %v668_v11, %v277_v54  ;;  %v317_v25 = vadd.f32 %v668_v11, %v278_v55  ;;  %v318_v26 = vadd.f32 %v668_v11, %v279_v56  ;;  %v319_v27 = vadd.f32 %v668_v11, %v280_v57 }
  0x22   : > { %v320_v28 = vadd.f32 %v668_v11, %v281_v58  ;;  %v321_v29 = vadd.f32 %v668_v11, %v282_v59  ;;  %v995_v30 = vadd.f32 %v668_v11, %v283_v60  ;;  %v997_v31 = vadd.f32 %v668_v11, %v284_v61 }
  0x23   : > { %v999_v32 = vadd.f32 %v668_v11, %v285_v62  ;;  %v1001_v33 = vadd.f32 %v668_v11, %v286_v63  ;;  %v1003_v34 = vadd.f32 %v668_v11, %v287_v0  ;;  %v1005_v35 = vadd.f32 %v668_v11, %v288_v1 }
  0x24   : > { %v1007_v36 = vadd.f32 %v668_v11, %v289_v2  ;;  %v1009_v37 = vadd.f32 %v668_v11, %v290_v8  ;;  %v1011_v38 = vadd.f32 %v668_v11, %v291_v9  ;;  %v1013_v39 = vadd.f32 %v668_v11, %v292_v10 }
  0x25   : > { %v1015_v40 = vadd.f32 %v668_v11, %v293_v4  ;;  %v1017_v41 = vadd.f32 %v668_v11, %v294_v5  ;;  %v1019_v42 = vadd.f32 %v668_v11, %v295_v6  ;;  %v1021_v43 = vadd.f32 %v668_v11, %v296_v7 }
  0x26   : > { %v1023_v44 = vadd.f32 %v668_v11, %v297_v12  ;;  %v1025_v45 = vadd.f32 %v668_v11, %v298_v13  ;;  %v1027_v46 = vadd.f32 %v668_v11, %v299_v14  ;;  %v1029_v47 = vadd.f32 %v668_v11, %v300_v15 }
  0x27   : > { %v1031_v48 = vadd.f32 %v668_v11, %v301_v16  ;;  %v1033_v49 = vadd.f32 %v668_v11, %v302_v17  ;;  %v1035_v50 = vadd.f32 %v668_v11, %v303_v18  ;;  %v1037_v51 = vadd.f32 %v668_v11, %v304_v19 }
  0x28   : > { %vm345_vm0 = vcmp.ge.f32.partialorder %v312_v20, 0.0  ;;  %vm346_vm1 = vcmp.ge.f32.partialorder %v313_v21, 0.0  ;;  %v378_v52 = vmul.f32 %v974_v3, %v312_v20  ;;  %v379_v53 = vmul.f32 %v974_v3, %v313_v21 }
  0x29   : > { %vm347_vm2 = vcmp.ge.f32.partialorder %v314_v22, 0.0  ;;  %vm348_vm3 = vcmp.ge.f32.partialorder %v315_v23, 0.0  ;;  %v380_v54 = vmul.f32 %v974_v3, %v314_v22  ;;  %v381_v55 = vmul.f32 %v974_v3, %v315_v23 }
  0x2a   : > { %v410_v56 = vsel %vm345_vm0, %v312_v20, %v378_v52  ;;  %v411_v57 = vsel %vm346_vm1, %v313_v21, %v379_v53  ;;  %vm349_vm4 = vcmp.ge.f32.partialorder %v316_v24, 0.0  ;;  %vm350_vm5 = vcmp.ge.f32.partialorder %v317_v25, 0.0 }
  0x2b   : > { %v802_v58 = vpack.c.bf16 %v411_v57, %v410_v56  ;;  %v412_v59 = vsel %vm347_vm2, %v314_v22, %v380_v54  ;;  %v413_v60 = vsel %vm348_vm3, %v315_v23, %v381_v55  ;;  %v382_v61 = vmul.f32 %v974_v3, %v316_v24 }
  0x2c   : > { %v807_v62 = vpack.c.bf16 %v413_v60, %v412_v59  ;;  %v383_v63 = vmul.f32 %v974_v3, %v317_v25  ;;  %vm351_vm6 = vcmp.ge.f32.partialorder %v318_v26, 0.0  ;;  %vm352_vm7 = vcmp.ge.f32.partialorder %v319_v27, 0.0 }
  0x2d   : > { %803 = vst [vmem:[%s1048_s30] sm:$0xff] %v802_v58   ;;  %v414_v0 = vsel %vm349_vm4, %v316_v24, %v382_v61  ;;  %v384_v1 = vmul.f32 %v974_v3, %v318_v26  ;;  %v385_v2 = vmul.f32 %v974_v3, %v319_v27  ;;  %vm353_vm8 = vcmp.ge.f32.partialorder %v320_v28, 0.0 }
  0x2e   : > { %894 = vst [vmem:[%s1048_s30 + $0x8] sm:$0xff] %v807_v62   ;;  %v415_v8 = vsel %vm350_vm5, %v317_v25, %v383_v63  ;;  %vm354_vm9 = vcmp.ge.f32.partialorder %v321_v29, 0.0  ;;  %v386_v9 = vmul.f32 %v974_v3, %v320_v28  ;;  %v387_v10 = vmul.f32 %v974_v3, %v321_v29 }
  0x2f   : > { %v812_v4 = vpack.c.bf16 %v415_v8, %v414_v0  ;;  %v416_v5 = vsel %vm351_vm6, %v318_v26, %v384_v1  ;;  %v417_v6 = vsel %vm352_vm7, %v319_v27, %v385_v2  ;;  %vm355_vm10 = vcmp.ge.f32.partialorder %v995_v30, 0.0 }
  0x30   : > { %v817_v7 = vpack.c.bf16 %v417_v6, %v416_v5  ;;  %v418_v11 = vsel %vm353_vm8, %v320_v28, %v386_v9  ;;  %v419_v12 = vsel %vm354_vm9, %v321_v29, %v387_v10  ;;  %vm356_vm11 = vcmp.ge.f32.partialorder %v997_v31, 0.0 }
  0x31   : > { %895 = vst [vmem:[%s1048_s30 + $0x10] sm:$0xff] %v812_v4   ;;  %v822_v13 = vpack.c.bf16 %v419_v12, %v418_v11  ;;  %v388_v14 = vmul.f32 %v974_v3, %v995_v30  ;;  %v389_v15 = vmul.f32 %v974_v3, %v997_v31  ;;  %vm357_vm12 = vcmp.ge.f32.partialorder %v999_v32, 0.0 }
  0x32   : > { %896 = vst [vmem:[%s1048_s30 + $0x18] sm:$0xff] %v817_v7   ;;  %vm358_vm13 = vcmp.ge.f32.partialorder %v1001_v33, 0.0  ;;  %v390_v16 = vmul.f32 %v974_v3, %v999_v32  ;;  %v391_v17 = vmul.f32 %v974_v3, %v1001_v33  ;;  %vm359_vm14 = vcmp.ge.f32.partialorder %v1003_v34, 0.0 }
  0x33   : > { %897 = vst [vmem:[%s1048_s30 + $0x20] sm:$0xff] %v822_v13   ;;  %v420_v18 = vsel %vm355_vm10, %v995_v30, %v388_v14  ;;  %v421_v19 = vsel %vm356_vm11, %v997_v31, %v389_v15  ;;  %vm360_vm15 = vcmp.ge.f32.partialorder %v1005_v35, 0.0  ;;  %v392_v20 = vmul.f32 %v974_v3, %v1003_v34 }
  0x34   : > { %v827_v21 = vpack.c.bf16 %v421_v19, %v420_v18  ;;  %v422_v22 = vsel %vm357_vm12, %v999_v32, %v390_v16  ;;  %v423_v23 = vsel %vm358_vm13, %v1001_v33, %v391_v17  ;;  %v393_v24 = vmul.f32 %v974_v3, %v1005_v35 }
  0x35   : > { %v832_v25 = vpack.c.bf16 %v423_v23, %v422_v22  ;;  %v424_v26 = vsel %vm359_vm14, %v1003_v34, %v392_v20  ;;  %vm361_vm0 = vcmp.ge.f32.partialorder %v1007_v36, 0.0  ;;  %vm362_vm1 = vcmp.ge.f32.partialorder %v1009_v37, 0.0 }
  0x36   : > { %898 = vst [vmem:[%s1048_s30 + $0x28] sm:$0xff] %v827_v21   ;;  %v425_v27 = vsel %vm360_vm15, %v1005_v35, %v393_v24  ;;  %v394_v28 = vmul.f32 %v974_v3, %v1007_v36  ;;  %v395_v29 = vmul.f32 %v974_v3, %v1009_v37  ;;  %vm363_vm2 = vcmp.ge.f32.partialorder %v1011_v38, 0.0 }
  0x37   : > { %899 = vst [vmem:[%s1048_s30 + $0x30] sm:$0xff] %v832_v25   ;;  %v837_v30 = vpack.c.bf16 %v425_v27, %v424_v26  ;;  %vm364_vm3 = vcmp.ge.f32.partialorder %v1013_v39, 0.0  ;;  %v396_v31 = vmul.f32 %v974_v3, %v1011_v38  ;;  %v397_v32 = vmul.f32 %v974_v3, %v1013_v39 }
  0x38   : > { %v426_v33 = vsel %vm361_vm0, %v1007_v36, %v394_v28  ;;  %v427_v34 = vsel %vm362_vm1, %v1009_v37, %v395_v29  ;;  %vm365_vm4 = vcmp.ge.f32.partialorder %v1015_v40, 0.0  ;;  %vm366_vm5 = vcmp.ge.f32.partialorder %v1017_v41, 0.0 }
  0x39   : > { %900 = vst [vmem:[%s1048_s30 + $0x38] sm:$0xff] %v837_v30   ;;  %v842_v35 = vpack.c.bf16 %v427_v34, %v426_v33  ;;  %v428_v52 = vsel %vm363_vm2, %v1011_v38, %v396_v31  ;;  %v429_v53 = vsel %vm364_vm3, %v1013_v39, %v397_v32  ;;  %v398_v54 = vmul.f32 %v974_v3, %v1015_v40 }
  0x3a   : > { %v847_v55 = vpack.c.bf16 %v429_v53, %v428_v52  ;;  %v399_v36 = vmul.f32 %v974_v3, %v1017_v41  ;;  %vm367_vm6 = vcmp.ge.f32.partialorder %v1019_v42, 0.0  ;;  %vm368_vm7 = vcmp.ge.f32.partialorder %v1021_v43, 0.0 }
  0x3b   : > { %901 = vst [vmem:[%s1048_s30 + $0x40] sm:$0xff] %v842_v35   ;;  %v430_v37 = vsel %vm365_vm4, %v1015_v40, %v398_v54  ;;  %v400_v56 = vmul.f32 %v974_v3, %v1019_v42  ;;  %v401_v38 = vmul.f32 %v974_v3, %v1021_v43  ;;  %vm369_vm8 = vcmp.ge.f32.partialorder %v1023_v44, 0.0 }
  0x3c   : > { %902 = vst [vmem:[%s1048_s30 + $0x48] sm:$0xff] %v847_v55   ;;  %v431_v39 = vsel %vm366_vm5, %v1017_v41, %v399_v36  ;;  %vm370_vm9 = vcmp.ge.f32.partialorder %v1025_v45, 0.0  ;;  %v402_v40 = vmul.f32 %v974_v3, %v1023_v44  ;;  %v403_v57 = vmul.f32 %v974_v3, %v1025_v45 }
  0x3d   : > { %v852_v58 = vpack.c.bf16 %v431_v39, %v430_v37  ;;  %v432_v59 = vsel %vm367_vm6, %v1019_v42, %v400_v56  ;;  %v433_v60 = vsel %vm368_vm7, %v1021_v43, %v401_v38  ;;  %vm371_vm10 = vcmp.ge.f32.partialorder %v1027_v46, 0.0 }
  0x3e   : > { %v857_v61 = vpack.c.bf16 %v433_v60, %v432_v59  ;;  %v434_v41 = vsel %vm369_vm8, %v1023_v44, %v402_v40  ;;  %v435_v62 = vsel %vm370_vm9, %v1025_v45, %v403_v57  ;;  %vm372_vm11 = vcmp.ge.f32.partialorder %v1029_v47, 0.0 }
  0x3f   : > { %903 = vst [vmem:[%s1048_s30 + $0x50] sm:$0xff] %v852_v58   ;;  %v862_v63 = vpack.c.bf16 %v435_v62, %v434_v41  ;;  %v404_v0 = vmul.f32 %v974_v3, %v1027_v46  ;;  %v405_v42 = vmul.f32 %v974_v3, %v1029_v47  ;;  %vm373_vm12 = vcmp.ge.f32.partialorder %v1031_v48, 0.0 }
  0x40   : > { %904 = vst [vmem:[%s1048_s30 + $0x58] sm:$0xff] %v857_v61   ;;  %vm374_vm13 = vcmp.ge.f32.partialorder %v1033_v49, 0.0  ;;  %v406_v43 = vmul.f32 %v974_v3, %v1031_v48  ;;  %v407_v44 = vmul.f32 %v974_v3, %v1033_v49  ;;  %vm375_vm14 = vcmp.ge.f32.partialorder %v1035_v50, 0.0 }
  0x41   : > { %905 = vst [vmem:[%s1048_s30 + $0x60] sm:$0xff] %v862_v63   ;;  %v436_v45 = vsel %vm371_vm10, %v1027_v46, %v404_v0  ;;  %v437_v1 = vsel %vm372_vm11, %v1029_v47, %v405_v42  ;;  %vm376_vm15 = vcmp.ge.f32.partialorder %v1037_v51, 0.0  ;;  %v408_v2 = vmul.f32 %v974_v3, %v1035_v50 }
  0x42   : > { %v867_v8 = vpack.c.bf16 %v437_v1, %v436_v45  ;;  %v438_v9 = vsel %vm373_vm12, %v1031_v48, %v406_v43  ;;  %v439_v10 = vsel %vm374_vm13, %v1033_v49, %v407_v44  ;;  %v409_v4 = vmul.f32 %v974_v3, %v1037_v51 }
  0x43   : > { %v872_v5 = vpack.c.bf16 %v439_v10, %v438_v9  ;;  %v440_v6 = vsel %vm375_vm14, %v1035_v50, %v408_v2 }
  0x44   : > { %906 = vst [vmem:[%s1048_s30 + $0x68] sm:$0xff] %v867_v8   ;;  %v441_v46 = vsel %vm376_vm15, %v1037_v51, %v409_v4 }
  0x45   : > { %907 = vst [vmem:[%s1048_s30 + $0x70] sm:$0xff] %v872_v5   ;;  %v877_v47 = vpack.c.bf16 %v441_v46, %v440_v6 }
  0x47   : > { %908 = vst [vmem:[%s1048_s30 + $0x78] sm:$0xff] %v877_v47  }
  0x48 PF: > { %s15_s17 = sadd.s32 1, %s923_s17  }
  0x49   : > { %p12_p4 = scmp.ge.s32.totalorder %s15_s17, 4  }
  0x4b   :  { %14 = sbr.rel (!%p12_p4) target bundleno = 2 (0x2), region = 66 }

// kernel: _conv_bn_prelu_impl.2
= control target key start
LH: loop header
LB: loop body
LE: loop exit
PB: predicated region body
PF: predicated region fallthrough
CT: control target
= control target key end

     0   :  { %s1293_s15 = smov 0   ;;  %s1478_s0 = inlined_call_operand.vmem [shape: bf16[512,128], index: 0, kind: input, shape index: {}]   ;;  %s1479_s1 = inlined_call_operand.vmem [shape: bf16[128,128], index: 1, kind: input, shape index: {}]   ;;  %s1480_s2 = inlined_call_operand.vmem [shape: bf16[512,128], index: 2, kind: output, shape index: {0}]   ;;  %s1481_s3 = inlined_call_operand.vmem [shape: f32[2,1,128], index: 3, kind: output, shape index: {1}]   ;;  %s1482_s4 = inlined_call_operand.vmem [shape: f32[2,1,128], index: 4, kind: output, shape index: {2}]  }
   0x1 LB: > { %s1299_s16 = sadd.s32 4294967295, %s1266_s15   ;;  %p950_p0 = scmp.ge.s32.totalorder %s1266_s15, 1  ;;  %s1266_s15 = sphi %s1293_s15, %s15_s15  }
   0x2   : > { %p168_p1 = scmp.lt.s32.totalorder %s1266_s15, 3 }
   0x4   : > { %p169_p2 = pnand %p950_p0, %p168_p1 }
   0x5   : > { %s951_s19 = sshll.u32 (!%p169_p2), %s1299_s16, 5  ;;  %p212_p4 = scmp.lt.s32.totalorder (!%p169_p2), %s1299_s16, 1 }
   0x6   : > { %172 = sbr.rel (%p169_p2) target bundleno = 320 (0x140), region = 28  ;;  %p201_p3 = scmp.lt.s32.totalorder (!%p169_p2), %s951_s19, 63 }
   0xb   : > { %v1236_v0 = vld [vmem:[%s1479_s1 + $0x38] sm:$0xff]   ;;  %v1237_v1 = vld [vmem:[%s1479_s1 + $0x30] sm:$0xff]   ;;  %s1484_s19 = smov (!%p201_p3, %s951_s19), 63  ;;  %v1238_v2 = vld [vmem:[%s1479_s1 + $0x28] sm:$0xff]   ;;  %s1486_s16 = smov (!%p212_p4, %s1299_s16), 1 }
   0xc   : > { %1164 = vmatprep.subr.bf16.mxu0 %v1236_v0  ;;  %1212 = vmatprep.subr.bf16.mxu1 %v1236_v0  ;;  %s952_s24 = sshll.u32 %s1484_s19, 2  ;;  %v1239_v3 = vld [vmem:[%s1479_s1 + $0x20] sm:$0xff]   ;;  %v1240_v5 = vld [vmem:[%s1479_s1 + $0x18] sm:$0xff]   ;;  %v1241_v6 = vld [vmem:[%s1479_s1 + $0x10] sm:$0xff]   ;;  %s214_s19 = scalar_lea.vmem %s1481_s3, %s1486_s16 }
   0xd   : > { %1165 = vmatpush3.bf16.msra.mxu0 %v1236_v0  ;;  %1220 = vmatpush3.bf16.msra.mxu1 %v1236_v0  ;;  %s1321_s27 = scalar_lea.vmem %s1478_s0, %s952_s24  ;;  %v1242_v8 = vld [vmem:[%s1479_s1 + $0x8] sm:$0xff]   ;;  %v1243_v9 = vld [vmem:[%s1479_s1] sm:$0xff]   ;;  %s1363_s14 = scalar_lea.vmem %s1480_s2, %s952_s24 }
   0xe   : > { %1166 = vmatprep.subr.bf16.mxu0 %v1237_v1  ;;  %1213 = vmatprep.subr.bf16.mxu1 %v1237_v1  ;;  %v1244_v4 = vld [vmem:[%s1321_s27] sm:$0xff]   ;;  %v1245_v10 = vld [vmem:[%s1321_s27 + $0x8] sm:$0xff]   ;;  %v1246_v12 = vld [vmem:[%s1321_s27 + $0x10] sm:$0xff]   ;;  %s217_s22 = scalar_lea.vmem %s1482_s4, %s1486_s16 }
   0xf   : > { %1180 = vmatprep.mubr.bf16.mxu0 %v1244_v4  ;;  %v1252_v7 = vld [vmem:[%s1321_s27 + $0x40] sm:$0xff]   ;;  %v1253_v11 = vld [vmem:[%s1321_s27 + $0x48] sm:$0xff]   ;;  %v1254_v13 = vld [vmem:[%s1321_s27 + $0x50] sm:$0xff]  }
  0x10   : > { %1196 = vmatprep.mubr.bf16.mxu1 %v1252_v7  ;;  %v1247_v14 = vld [vmem:[%s1321_s27 + $0x18] sm:$0xff]   ;;  %v1248_v16 = vld [vmem:[%s1321_s27 + $0x20] sm:$0xff]   ;;  %v1249_v18 = vld [vmem:[%s1321_s27 + $0x28] sm:$0xff]  }
  0x11   : > { %1167 = vmatpush3.bf16.msra.mxu0 %v1237_v1  ;;  %1221 = vmatpush3.bf16.msra.mxu1 %v1237_v1  ;;  %v1255_v15 = vld [vmem:[%s1321_s27 + $0x58] sm:$0xff]   ;;  %v1256_v17 = vld [vmem:[%s1321_s27 + $0x60] sm:$0xff]   ;;  %v1257_v19 = vld [vmem:[%s1321_s27 + $0x68] sm:$0xff]  }
  0x12   : > { %1168 = vmatprep.subr.bf16.mxu0 %v1238_v2  ;;  %1214 = vmatprep.subr.bf16.mxu1 %v1238_v2  ;;  %v1250_v20 = vld [vmem:[%s1321_s27 + $0x30] sm:$0xff]   ;;  %v1251_v22 = vld [vmem:[%s1321_s27 + $0x38] sm:$0xff]  }
  0x13   : > { %v1258_v21 = vld [vmem:[%s1321_s27 + $0x70] sm:$0xff]   ;;  %v1259_v23 = vld [vmem:[%s1321_s27 + $0x78] sm:$0xff]  }
  0x15   : > { %1169 = vmatpush3.bf16.msra.mxu0 %v1238_v2  ;;  %1222 = vmatpush3.bf16.msra.mxu1 %v1238_v2 }
  0x16   : > { %1170 = vmatprep.subr.bf16.mxu0 %v1239_v3  ;;  %1215 = vmatprep.subr.bf16.mxu1 %v1239_v3 }
  0x19   : > { %1171 = vmatpush3.bf16.msra.mxu0 %v1239_v3  ;;  %1223 = vmatpush3.bf16.msra.mxu1 %v1239_v3 }
  0x1a   : > { %1172 = vmatprep.subr.bf16.mxu0 %v1240_v5  ;;  %1216 = vmatprep.subr.bf16.mxu1 %v1240_v5 }
  0x1d   : > { %1173 = vmatpush3.bf16.msra.mxu0 %v1240_v5  ;;  %1224 = vmatpush3.bf16.msra.mxu1 %v1240_v5 }
  0x1e   : > { %1174 = vmatprep.subr.bf16.mxu0 %v1241_v6  ;;  %1217 = vmatprep.subr.bf16.mxu1 %v1241_v6 }
  0x21   : > { %1175 = vmatpush3.bf16.msra.mxu0 %v1241_v6  ;;  %1225 = vmatpush3.bf16.msra.mxu1 %v1241_v6 }
  0x22   : > { %1176 = vmatprep.subr.bf16.mxu0 %v1242_v8  ;;  %1218 = vmatprep.subr.bf16.mxu1 %v1242_v8 }
  0x25   : > { %1177 = vmatpush3.bf16.msra.mxu0 %v1242_v8  ;;  %1226 = vmatpush3.bf16.msra.mxu1 %v1242_v8 }
  0x26   : > { %1178 = vmatprep.subr.bf16.mxu0 %v1243_v9  ;;  %1219 = vmatprep.subr.bf16.mxu1 %v1243_v9 }
  0x29   : > { %1179 = vmatpush3.bf16.msra.mxu0 %v1243_v9  ;;  %1227 = vmatpush3.bf16.msra.mxu1 %v1243_v9 }
  0x2c   : > { %1181 = vmatmul.mubr.bf16.vlgmr.msra.gmra.mxu0 %v1245_v10  ;;  %1197 = vmatmul.mubr.bf16.vlgmr.msra.gmra.mxu1 %v1253_v11 }
  0x2d   : > { %1184 = vmatprep.mubr.bf16.mxu0 %v1246_v12  ;;  %1200 = vmatprep.mubr.bf16.mxu1 %v1254_v13 }
  0x34   : > { %1185 = vmatmul.mubr.bf16.gmra.mxu0 %v1247_v14  ;;  %1201 = vmatmul.mubr.bf16.gmra.mxu1 %v1255_v15 }
  0x35   : > { %1188 = vmatprep.mubr.bf16.mxu0 %v1248_v16  ;;  %1204 = vmatprep.mubr.bf16.mxu1 %v1256_v17 }
  0x3c   : > { %1189 = vmatmul.mubr.bf16.gmra.mxu0 %v1249_v18  ;;  %1205 = vmatmul.mubr.bf16.gmra.mxu1 %v1257_v19 }
  0x3d   : > { %1192 = vmatprep.mubr.bf16.mxu0 %v1250_v20  ;;  %1208 = vmatprep.mubr.bf16.mxu1 %v1258_v21 }
  0x44   : > { %1193 = vmatmul.mubr.bf16.gmra.mxu0 %v1251_v22  ;;  %1209 = vmatmul.mubr.bf16.gmra.mxu1 %v1259_v23 }
  0xec   : > { %v1182_v24 = vpop.f32.mrf.mxu0  ;;  %v1354_v25 = vpop.f32.mrf.mxu1 }
  0xed   : > { %v612_v41 = vmul.f32 %v1182_v24, %v1182_v24 }
  0xee   : > { %v445_v26 = vpop.f32.mrf.mxu0  ;;  %v1356_v27 = vpop.f32.mrf.mxu1 }
  0xef   : > { %v610_v34 = vmul.f32 %v445_v26, %v445_v26 }
  0xf0   : > { %v1183_v28 = vpop.f32.mrf.mxu0  ;;  %v1365_v29 = vpop.f32.mrf.mxu1 }
  0xf1   : > { %v1053_v30 = vpack.c.bf16 %v1183_v28, %v1182_v24  ;;  %v1093_v31 = vpack.c.bf16 %v1365_v29, %v1354_v25  ;;  %v613_v46 = vmul.f32 %v1183_v28, %v1183_v28 }
  0xf2   : > { %v448_v32 = vpop.f32.mrf.mxu0  ;;  %v1369_v33 = vpop.f32.mrf.mxu1 }
  0xf3   : > { %1125 = vst [vmem:[%s1363_s14 + $0x8] sm:$0xff] %v1053_v30   ;;  %v572_v35 = vadd.f32 %v448_v32, %v445_v26  ;;  %v611_v36 = vmul.f32 %v448_v32, %v448_v32  ;;  %v1048_v37 = vpack.c.bf16 %v448_v32, %v445_v26  ;;  %1133 = vst [vmem:[%s1363_s14 + $0x48] sm:$0xff] %v1093_v31  }
  0xf4   : > { %v1186_v38 = vpop.f32.mrf.mxu0  ;;  %v1088_v39 = vpack.c.bf16 %v1369_v33, %v1356_v27  ;;  %v1375_v40 = vpop.f32.mrf.mxu1 }
  0xf5   : > { %v573_v42 = vadd.f32 %v1182_v24, %v572_v35  ;;  %v642_v43 = vadd.f32 %v611_v36, %v610_v34  ;;  %1049 = vst [vmem:[%s1363_s14] sm:$0xff] %v1048_v37   ;;  %v616_v1 = vmul.f32 %v1186_v38, %v1186_v38 }
  0xf6   : > { %v461_v44 = vpop.f32.mrf.mxu0  ;;  %1132 = vst [vmem:[%s1363_s14 + $0x40] sm:$0xff] %v1088_v39   ;;  %v1379_v45 = vpop.f32.mrf.mxu1 }
  0xf7   : > { %v643_v47 = vadd.f32 %v642_v43, %v612_v41  ;;  %v574_v48 = vadd.f32 %v1183_v28, %v573_v42  ;;  %v614_v52 = vmul.f32 %v461_v44, %v461_v44 }
  0xf8   : > { %v1187_v49 = vpop.f32.mrf.mxu0  ;;  %v1381_v50 = vpop.f32.mrf.mxu1 }
  0xf9   : > { %v575_v51 = vadd.f32 %v574_v48, %v461_v44  ;;  %v644_v53 = vadd.f32 %v643_v47, %v613_v46  ;;  %v1063_v54 = vpack.c.bf16 %v1187_v49, %v1186_v38  ;;  %v1103_v56 = vpack.c.bf16 %v1381_v50, %v1375_v40 }
  0xfa   : > { %v464_v55 = vpop.f32.mrf.mxu0  ;;  %v1385_v57 = vpop.f32.mrf.mxu1  ;;  %v617_v6 = vmul.f32 %v1187_v49, %v1187_v49 }
  0xfb   : > { %v645_v58 = vadd.f32 %v644_v53, %v614_v52  ;;  %1127 = vst [vmem:[%s1363_s14 + $0x18] sm:$0xff] %v1063_v54   ;;  %v576_v59 = vadd.f32 %v575_v51, %v464_v55  ;;  %v615_v60 = vmul.f32 %v464_v55, %v464_v55  ;;  %v1058_v61 = vpack.c.bf16 %v464_v55, %v461_v44 }
  0xfc   : > { %v1190_v62 = vpop.f32.mrf.mxu0  ;;  %1135 = vst [vmem:[%s1363_s14 + $0x58] sm:$0xff] %v1103_v56   ;;  %v1098_v63 = vpack.c.bf16 %v1385_v57, %v1379_v45  ;;  %v1391_v0 = vpop.f32.mrf.mxu1 }
  0xfd   : > { %v577_v2 = vadd.f32 %v1186_v38, %v576_v59  ;;  %v646_v3 = vadd.f32 %v645_v58, %v615_v60  ;;  %1126 = vst [vmem:[%s1363_s14 + $0x10] sm:$0xff] %v1058_v61   ;;  %v620_v26 = vmul.f32 %v1190_v62, %v1190_v62  ;;  %v626_v61 = vmul.f32 %v1356_v27, %v1356_v27 }
  0xfe   : > { %v477_v4 = vpop.f32.mrf.mxu0  ;;  %1134 = vst [vmem:[%s1363_s14 + $0x50] sm:$0xff] %v1098_v63   ;;  %v1395_v5 = vpop.f32.mrf.mxu1 }
  0xff   : > { %v647_v7 = vadd.f32 %v646_v3, %v616_v1  ;;  %v578_v8 = vadd.f32 %v1187_v49, %v577_v2  ;;  %v618_v12 = vmul.f32 %v477_v4, %v477_v4  ;;  %v627_v2 = vmul.f32 %v1369_v33, %v1369_v33 }
 0x100   : > { %v1191_v9 = vpop.f32.mrf.mxu0  ;;  %v1397_v10 = vpop.f32.mrf.mxu1 }
 0x101   : > { %v579_v11 = vadd.f32 %v578_v8, %v477_v4  ;;  %v648_v13 = vadd.f32 %v647_v7, %v617_v6  ;;  %v1073_v14 = vpack.c.bf16 %v1191_v9, %v1190_v62  ;;  %v1113_v16 = vpack.c.bf16 %v1397_v10, %v1391_v0 }
 0x102   : > { %v480_v15 = vpop.f32.mrf.mxu0  ;;  %v1401_v17 = vpop.f32.mrf.mxu1  ;;  %v621_v34 = vmul.f32 %v1191_v9, %v1191_v9  ;;  %v629_v8 = vmul.f32 %v1365_v29, %v1365_v29 }
 0x103   : > { %v649_v18 = vadd.f32 %v648_v13, %v618_v12  ;;  %1129 = vst [vmem:[%s1363_s14 + $0x28] sm:$0xff] %v1073_v14   ;;  %v580_v19 = vadd.f32 %v579_v11, %v480_v15  ;;  %v619_v20 = vmul.f32 %v480_v15, %v480_v15  ;;  %v1068_v21 = vpack.c.bf16 %v480_v15, %v477_v4 }
 0x104   : > { %v1194_v22 = vpop.f32.mrf.mxu0  ;;  %1137 = vst [vmem:[%s1363_s14 + $0x68] sm:$0xff] %v1113_v16   ;;  %v1108_v23 = vpack.c.bf16 %v1401_v17, %v1395_v5  ;;  %v1407_v24 = vpop.f32.mrf.mxu1  ;;  %v628_v4 = vmul.f32 %v1354_v25, %v1354_v25  ;;  %v630_v12 = vmul.f32 %v1379_v45, %v1379_v45  ;;  %v631_v15 = vmul.f32 %v1385_v57, %v1385_v57 }
 0x105   : > { %v581_v28 = vadd.f32 %v1190_v62, %v580_v19  ;;  %v650_v30 = vadd.f32 %v649_v18, %v619_v20  ;;  %1128 = vst [vmem:[%s1363_s14 + $0x20] sm:$0xff] %v1068_v21   ;;  %v624_v54 = vmul.f32 %v1194_v22, %v1194_v22  ;;  %v634_v21 = vmul.f32 %v1395_v5, %v1395_v5 }
 0x106   : > { %v493_v31 = vpop.f32.mrf.mxu0  ;;  %1136 = vst [vmem:[%s1363_s14 + $0x60] sm:$0xff] %v1108_v23   ;;  %v1411_v32 = vpop.f32.mrf.mxu1 }
 0x107   : > { %v651_v35 = vadd.f32 %v650_v30, %v620_v26  ;;  %v582_v36 = vadd.f32 %v1191_v9, %v581_v28  ;;  %v622_v41 = vmul.f32 %v493_v31, %v493_v31  ;;  %v635_v26 = vmul.f32 %v1401_v17, %v1401_v17 }
 0x108   : > { %v1195_v37 = vpop.f32.mrf.mxu0  ;;  %v1413_v38 = vpop.f32.mrf.mxu1 }
 0x109   : > { %v583_v39 = vadd.f32 %v582_v36, %v493_v31  ;;  %v652_v42 = vadd.f32 %v651_v35, %v621_v34  ;;  %v1083_v43 = vpack.c.bf16 %v1195_v37, %v1194_v22  ;;  %v1123_v46 = vpack.c.bf16 %v1413_v38, %v1407_v24 }
 0x10a   : > { %v496_v44 = vpop.f32.mrf.mxu0  ;;  %v560_v47 = vpop.f32.mrf.mxu1  ;;  %v625_v58 = vmul.f32 %v1195_v37, %v1195_v37  ;;  %v638_v35 = vmul.f32 %v1411_v32, %v1411_v32 }
 0x10b   : > { %v653_v48 = vadd.f32 %v652_v42, %v622_v41  ;;  %1131 = vst [vmem:[%s1363_s14 + $0x38] sm:$0xff] %v1083_v43   ;;  %v584_v49 = vadd.f32 %v583_v39, %v496_v44  ;;  %v623_v51 = vmul.f32 %v496_v44, %v496_v44  ;;  %v1078_v52 = vpack.c.bf16 %v496_v44, %v493_v31 }
 0x10c   : > { %1139 = vst [vmem:[%s1363_s14 + $0x78] sm:$0xff] %v1123_v46   ;;  %v1118_v53 = vpack.c.bf16 %v560_v47, %v1411_v32  ;;  %v639_v39 = vmul.f32 %v560_v47, %v560_v47  ;;  %v641_v43 = vmul.f32 %v1413_v38, %v1413_v38 }
 0x10d   : > { %v585_v55 = vadd.f32 %v1194_v22, %v584_v49  ;;  %v654_v56 = vadd.f32 %v653_v48, %v623_v51  ;;  %1130 = vst [vmem:[%s1363_s14 + $0x30] sm:$0xff] %v1078_v52  }
 0x10e   : > { %1138 = vst [vmem:[%s1363_s14 + $0x70] sm:$0xff] %v1118_v53  }
 0x10f   : > { %v586_v59 = vadd.f32 %v1195_v37, %v585_v55  ;;  %v655_v60 = vadd.f32 %v654_v56, %v624_v54 }
 0x111   : > { %v656_v62 = vadd.f32 %v655_v60, %v625_v58  ;;  %v587_v63 = vadd.f32 %v586_v59, %v1356_v27 }
 0x113   : > { %v588_v1 = vadd.f32 %v587_v63, %v1369_v33  ;;  %v657_v3 = vadd.f32 %v656_v62, %v626_v61 }
 0x115   : > { %v589_v6 = vadd.f32 %v1354_v25, %v588_v1  ;;  %v658_v7 = vadd.f32 %v657_v3, %v627_v2  ;;  %v632_v25 = vmul.f32 %v1375_v40, %v1375_v40 }
 0x117   : > { %v659_v9 = vadd.f32 %v658_v7, %v628_v4  ;;  %v590_v11 = vadd.f32 %v1365_v29, %v589_v6  ;;  %v633_v29 = vmul.f32 %v1381_v50, %v1381_v50 }
 0x119   : > { %v591_v27 = vadd.f32 %v590_v11, %v1379_v45  ;;  %v660_v13 = vadd.f32 %v659_v9, %v629_v8 }
 0x11b   : > { %v661_v33 = vadd.f32 %v660_v13, %v630_v12  ;;  %v592_v14 = vadd.f32 %v591_v27, %v1385_v57 }
 0x11d   : > { %v593_v16 = vadd.f32 %v1375_v40, %v592_v14  ;;  %v662_v18 = vadd.f32 %v661_v33, %v631_v15  ;;  %v636_v40 = vmul.f32 %v1391_v0, %v1391_v0 }
 0x11f   : > { %v663_v19 = vadd.f32 %v662_v18, %v632_v25  ;;  %v594_v20 = vadd.f32 %v1381_v50, %v593_v16  ;;  %v637_v50 = vmul.f32 %v1397_v10, %v1397_v10 }
 0x121   : > { %v595_v45 = vadd.f32 %v594_v20, %v1395_v5  ;;  %v664_v22 = vadd.f32 %v663_v19, %v633_v29 }
 0x123   : > { %v665_v23 = vadd.f32 %v664_v22, %v634_v21  ;;  %v596_v57 = vadd.f32 %v595_v45, %v1401_v17 }
 0x125   : > { %v597_v28 = vadd.f32 %v1391_v0, %v596_v57  ;;  %v666_v30 = vadd.f32 %v665_v23, %v635_v26  ;;  %v640_v0 = vmul.f32 %v1407_v24, %v1407_v24 }
 0x127   : > { %v667_v31 = vadd.f32 %v666_v30, %v636_v40  ;;  %v598_v5 = vadd.f32 %v1397_v10, %v597_v28 }
 0x129   : > { %v599_v34 = vadd.f32 %v598_v5, %v1411_v32  ;;  %v668_v36 = vadd.f32 %v667_v31, %v637_v50 }
 0x12b   : > { %v669_v17 = vadd.f32 %v668_v36, %v638_v35  ;;  %v600_v37 = vadd.f32 %v599_v34, %v560_v47 }
 0x12d   : > { %v601_v41 = vadd.f32 %v1407_v24, %v600_v37  ;;  %v670_v42 = vadd.f32 %v669_v17, %v639_v39 }
 0x12f   : > { %v602_v10 = vadd.f32 %v1413_v38, %v601_v41  ;;  %v671_v44 = vadd.f32 %v670_v42, %v640_v0 }
 0x131   : > { %v603_v46 = vrot.slane %v602_v10, 4  ;;  %v672_v48 = vadd.f32 %v671_v44, %v641_v43 }
 0x133   : > { %v604_v32 = vadd.f32 %v603_v46, %v602_v10  ;;  %v673_v49 = vrot.slane %v672_v48, 4 }
 0x135   : > { %v605_v51 = vrot.slane %v604_v32, 2  ;;  %v674_v52 = vadd.f32 %v673_v49, %v672_v48 }
 0x137   : > { %v606_v47 = vadd.f32 %v605_v51, %v604_v32  ;;  %v675_v53 = vrot.slane %v674_v52, 2 }
 0x139   : > { %v607_v54 = vrot.slane %v606_v47, 1  ;;  %v676_v55 = vadd.f32 %v675_v53, %v674_v52 }
 0x13b   : > { %v608_v24 = vadd.f32 %v607_v54, %v606_v47  ;;  %v677_v56 = vrot.slane %v676_v55, 1 }
 0x13d   : > { %609 = vst [vmem:[%s214_s19] sm:$0x1] %v608_v24  ;;  %v678_v38 = vadd.f32 %v677_v56, %v676_v55 }
 0x13f   : > { %679 = vst [vmem:[%s217_s22] sm:$0x1] %v678_v38 }
 0x140 PF: > { %s15_s15 = sadd.s32 1, %s1266_s15  }
 0x141   : > { %p12_p5 = scmp.ge.s32.totalorder %s15_s15, 4  }
 0x143   :  { %14 = sbr.rel (!%p12_p5) target bundleno = 1 (0x1), region = 82 }

</bundles_post_ra>
